<compile_context>
chip_gen: v6e
topology: v6e:2x2x1
jax: 0.10.0
libtpu: 0.0.40
codegen_flags: <defaults>
</compile_context>

<pallas_src>
import numpy as np
import jax
import jax.numpy as jnp
from jax.experimental import pallas as pl
from jax.experimental.pallas import tpu as pltpu


def critic_fc_kernel(s_ref, a_ref,
                     w1s_ref, w1a_ref, b1_ref,
                     w2_ref, b2_ref,
                     wq_ref, bq_ref,
                     q_ref):
    """Fused CriticFc forward on one batch tile.

    s_ref   : (TB, Ds)  state tile
    a_ref   : (TB, Da)  action tile
    w1s_ref : (Ds, F1)  fc1 weight rows for the state part  (nl scale folded in)
    w1a_ref : (Da, F1)  fc1 weight rows for the action part (nl scale folded in)
    b1_ref  : (1, F1)
    w2_ref  : (F1, F2), b2_ref: (1, F2)
    wq_ref  : (1, F2)   q-head weight as a row vector
    bq_ref  : (1, 1)
    q_ref   : (TB, 1)   scalar Q per batch row
    """
    # fc1 + relu, with the concat fused away:
    #   [s, a] @ [w1_s; w1_a] == s @ w1_s + a @ w1_a    (MXU, f32 accumulate)
    h1 = jnp.dot(s_ref[...], w1s_ref[...], preferred_element_type=jnp.float32)
    h1 = h1 + jnp.dot(a_ref[...], w1a_ref[...], preferred_element_type=jnp.float32)
    h1 = jnp.maximum(h1 + b1_ref[...], 0.0)

    # fc2 + relu (MXU)
    h2 = jnp.dot(h1, w2_ref[...], preferred_element_type=jnp.float32) + b2_ref[...]
    h2 = jnp.maximum(h2, 0.0)

    # q head: output width 1 -> VPU multiply + XLU lane reduction, no MXU pass.
    q_ref[...] = jnp.sum(h2 * wq_ref[...], axis=-1, keepdims=True) + bq_ref[...]


def prepare_kernel_params(params):
    """Fold the frozen diagonal 'nl' layer into fc1's weights (done once).

    (x * scale) @ W == x @ (scale.T * W), and nl's bias is identically zero,
    so the per-row normalization vanishes from the kernel entirely.
    """
    return {
        "w1_s": params["scale_s"].T * params["w1_s"],   # (Ds, F1)
        "w1_a": params["scale_a"].T * params["w1_a"],   # (Da, F1)
        "b1": params["b1"], "w2": params["w2"], "b2": params["b2"],
        "wq_row": params["wq_row"], "bq": params["bq"],
    }


def critic_fc_forward(state, action, kparams, *, max_batch_tile=512):
    """Run the fused Pallas kernel, tiling over the batch dimension."""
    state = state.astype(jnp.float32)
    action = action.astype(jnp.float32)
    B, Ds = state.shape
    Da = action.shape[1]
    F1 = kparams["w1_s"].shape[1]
    F2 = kparams["w2"].shape[1]

    # Batch tile: whole batch if small, else a multiple-of-8 tile (sublane
    # aligned).  Weights stay resident across grid steps (index_map -> (0,0)).
    TB = B if B <= max_batch_tile else max_batch_tile
    grid = (pl.cdiv(B, TB),)

    row_map = lambda i: (i, 0)   # tiled over batch
    rep_map = lambda i: (0, 0)   # resident (same block every step)

    in_specs = [
        pl.BlockSpec((TB, Ds), row_map),    # state
        pl.BlockSpec((TB, Da), row_map),    # action
        pl.BlockSpec((Ds, F1), rep_map),    # w1_s (nl-folded)
        pl.BlockSpec((Da, F1), rep_map),    # w1_a (nl-folded)
        pl.BlockSpec((1, F1), rep_map),     # b1
        pl.BlockSpec((F1, F2), rep_map),    # w2
        pl.BlockSpec((1, F2), rep_map),     # b2
        pl.BlockSpec((1, F2), rep_map),     # wq (row)
        pl.BlockSpec((1, 1), rep_map),      # bq
    ]
    out_spec = pl.BlockSpec((TB, 1), row_map)

    # TODO(synk): for large training batches on v6e/v7x, cast activations and
    # weights to bfloat16 at this boundary (keep f32 accumulation) to use the
    # native bf16 MXU path; kept f32 here for exactness at tiny shapes.
    return pl.pallas_call(
        critic_fc_kernel,
        out_shape=jax.ShapeDtypeStruct((B, 1), jnp.float32),
        grid=grid,
        in_specs=in_specs,
        out_specs=out_spec,
        compiler_params=pltpu.CompilerParams(
            dimension_semantics=("parallel",)),
    )(state, action,
      kparams["w1_s"], kparams["w1_a"], kparams["b1"],
      kparams["w2"], kparams["b2"],
      kparams["wq_row"], kparams["bq"])


def init_params(key, input_size, fc1_dims, fc2_dims, action_size,
                input_bds, action_bds):
    """Deterministic parameter init mirroring CriticFc.__init__ (float32)."""
    D = input_size + action_size

    # nl: frozen diagonal normalization -> per-feature scale vectors, no bias.
    sab = 1.0 / np.concatenate((np.asarray(input_bds, np.float32),
                                np.asarray(action_bds, np.float32)))
    scale_s = jnp.asarray(sab[:input_size].reshape(1, input_size), jnp.float32)
    scale_a = jnp.asarray(sab[input_size:].reshape(1, action_size), jnp.float32)

    def torch_linear(k, fan_in, fan_out):
        # PyTorch default nn.Linear init: U(-1/sqrt(fan_in), 1/sqrt(fan_in))
        kw, kb = jax.random.split(k)
        bound = 1.0 / np.sqrt(fan_in)
        w = jax.random.uniform(kw, (fan_in, fan_out), jnp.float32, -bound, bound)
        b = jax.random.uniform(kb, (1, fan_out), jnp.float32, -bound, bound)
        return w, b

    k1, k2, k3 = jax.random.split(key, 3)
    w1, b1 = torch_linear(k1, D, fc1_dims)
    w1_s = w1[:input_size]          # (Ds, F1)
    w1_a = w1[input_size:]          # (Da, F1)
    w2, b2 = torch_linear(k2, fc1_dims, fc2_dims)

    # q head: uniform(-0.01, 0.01); stored as a (1, F2) row vector.
    kw, kb = jax.random.split(k3)
    f3 = 0.01
    wq_row = jax.random.uniform(kw, (1, fc2_dims), jnp.float32, -f3, f3)
    bq = jax.random.uniform(kb, (1, 1), jnp.float32, -f3, f3)

    return {"scale_s": scale_s, "scale_a": scale_a,
            "w1_s": w1_s, "w1_a": w1_a, "b1": b1,
            "w2": w2, "b2": b2, "wq_row": wq_row, "bq": bq}


if __name__ == "__main__":
    # Small shapes consistent with the module's forward.
    batch = 4
    input_size = 24
    action_size = 8
    fc1_dims = 32
    fc2_dims = 16
    input_bds = np.full((input_size,), 2.0, np.float32)
    action_bds = np.full((action_size,), 0.5, np.float32)

    key = jax.random.PRNGKey(0)
    kp, ks, ka = jax.random.split(key, 3)
    params = init_params(kp, input_size, fc1_dims, fc2_dims, action_size,
                         input_bds, action_bds)
    kparams = prepare_kernel_params(params)

    state = jax.random.normal(ks, (batch, input_size), jnp.float32)
    action = jax.random.normal(ka, (batch, action_size), jnp.float32)

    q = critic_fc_forward(state, action, kparams)
    jax.block_until_ready(q)

    # Pure-JAX reference with the ORIGINAL (unfused) module math:
    # concat -> frozen diag nl -> fc1 -> relu -> fc2 -> relu -> q.
    sa = jnp.concatenate([state, action], axis=1)
    nl_out = sa * jnp.concatenate([params["scale_s"], params["scale_a"]], axis=1)
    w1_full = jnp.concatenate([params["w1_s"], params["w1_a"]], axis=0)
    h1 = jnp.maximum(nl_out @ w1_full + params["b1"], 0.0)
    h2 = jnp.maximum(h1 @ params["w2"] + params["b2"], 0.0)
    q_ref = h2 @ params["wq_row"].T + params["bq"]

    np.testing.assert_allclose(np.asarray(q), np.asarray(q_ref),
                               rtol=1e-5, atol=1e-5)
    assert q.shape == (batch, 1)
    print("KERNEL_OK")
</pallas_src>

<mosaic_0001>
module attributes {stable_mosaic.version = 11 : i64} {
  func.func @critic_fc_kernel(%arg0: i32, %arg1: memref<4x24xf32, #tpu.memory_space<vmem>>, %arg2: memref<4x8xf32, #tpu.memory_space<vmem>>, %arg3: memref<24x32xf32, #tpu.memory_space<vmem>>, %arg4: memref<8x32xf32, #tpu.memory_space<vmem>>, %arg5: memref<1x32xf32, #tpu.memory_space<vmem>>, %arg6: memref<32x16xf32, #tpu.memory_space<vmem>>, %arg7: memref<1x16xf32, #tpu.memory_space<vmem>>, %arg8: memref<1x16xf32, #tpu.memory_space<vmem>>, %arg9: memref<1x1xf32, #tpu.memory_space<vmem>>, %arg10: memref<4x1xf32, #tpu.memory_space<vmem>>) attributes {dimension_semantics = [#tpu.dimension_semantics<parallel>], iteration_bounds = array<i64: 1>, scalar_prefetch = 0 : i64, scratch_operands = 0 : i64, tpu.core_type = #tpu.core_type<tc>, window_params = [{transform_indices = @transform_0, window_bounds = array<i64: 4, 24>}, {transform_indices = @transform_1, window_bounds = array<i64: 4, 8>}, {pipeline_mode = #tpu.pipeline_mode<synchronous>, transform_indices = @transform_2, window_bounds = array<i64: 24, 32>}, {pipeline_mode = #tpu.pipeline_mode<synchronous>, transform_indices = @transform_3, window_bounds = array<i64: 8, 32>}, {pipeline_mode = #tpu.pipeline_mode<synchronous>, transform_indices = @transform_4, window_bounds = array<i64: 1, 32>}, {pipeline_mode = #tpu.pipeline_mode<synchronous>, transform_indices = @transform_5, window_bounds = array<i64: 32, 16>}, {pipeline_mode = #tpu.pipeline_mode<synchronous>, transform_indices = @transform_6, window_bounds = array<i64: 1, 16>}, {pipeline_mode = #tpu.pipeline_mode<synchronous>, transform_indices = @transform_7, window_bounds = array<i64: 1, 16>}, {pipeline_mode = #tpu.pipeline_mode<synchronous>, transform_indices = @transform_8, window_bounds = array<i64: 1, 1>}, {transform_indices = @transform_9, window_bounds = array<i64: 4, 1>}]} {
    %c0 = arith.constant 0 : index
    %c0_0 = arith.constant 0 : index
    %0 = vector.load %arg1[%c0, %c0_0] : memref<4x24xf32, #tpu.memory_space<vmem>>, vector<4x24xf32>
    %c0_1 = arith.constant 0 : index
    %c0_2 = arith.constant 0 : index
    %1 = vector.load %arg3[%c0_1, %c0_2] : memref<24x32xf32, #tpu.memory_space<vmem>>, vector<24x32xf32>
    %cst = arith.constant dense<0.000000e+00> : vector<4x32xf32>
    %2 = tpu.matmul %0, %1, %cst {dimension_numbers = #tpu.dot_dimension_numbers<[1], [0], [0], [1], [0, 0, 1, 1], [], []>} : vector<4x24xf32>, vector<24x32xf32>, vector<4x32xf32> -> vector<4x32xf32>
    %c0_3 = arith.constant 0 : index
    %c0_4 = arith.constant 0 : index
    %3 = vector.load %arg2[%c0_3, %c0_4] : memref<4x8xf32, #tpu.memory_space<vmem>>, vector<4x8xf32>
    %c0_5 = arith.constant 0 : index
    %c0_6 = arith.constant 0 : index
    %4 = vector.load %arg4[%c0_5, %c0_6] : memref<8x32xf32, #tpu.memory_space<vmem>>, vector<8x32xf32>
    %cst_7 = arith.constant dense<0.000000e+00> : vector<4x32xf32>
    %5 = tpu.matmul %3, %4, %cst_7 {dimension_numbers = #tpu.dot_dimension_numbers<[1], [0], [0], [1], [0, 0, 1, 1], [], []>} : vector<4x8xf32>, vector<8x32xf32>, vector<4x32xf32> -> vector<4x32xf32>
    %6 = arith.addf %2, %5 : vector<4x32xf32>
    %c0_8 = arith.constant 0 : index
    %c0_9 = arith.constant 0 : index
    %7 = vector.load %arg5[%c0_8, %c0_9] : memref<1x32xf32, #tpu.memory_space<vmem>>, vector<1x32xf32>
    %8 = vector.broadcast %7 : vector<1x32xf32> to vector<4x32xf32>
    %9 = arith.addf %6, %8 : vector<4x32xf32>
    %cst_10 = arith.constant 0.000000e+00 : f32
    %10 = vector.broadcast %cst_10 : f32 to vector<4x32xf32>
    %11 = arith.maximumf %9, %10 : vector<4x32xf32>
    %c0_11 = arith.constant 0 : index
    %c0_12 = arith.constant 0 : index
    %12 = vector.load %arg6[%c0_11, %c0_12] : memref<32x16xf32, #tpu.memory_space<vmem>>, vector<32x16xf32>
    %cst_13 = arith.constant dense<0.000000e+00> : vector<4x16xf32>
    %13 = tpu.matmul %11, %12, %cst_13 {dimension_numbers = #tpu.dot_dimension_numbers<[1], [0], [0], [1], [0, 0, 1, 1], [], []>} : vector<4x32xf32>, vector<32x16xf32>, vector<4x16xf32> -> vector<4x16xf32>
    %c0_14 = arith.constant 0 : index
    %c0_15 = arith.constant 0 : index
    %14 = vector.load %arg7[%c0_14, %c0_15] : memref<1x16xf32, #tpu.memory_space<vmem>>, vector<1x16xf32>
    %15 = vector.broadcast %14 : vector<1x16xf32> to vector<4x16xf32>
    %16 = arith.addf %13, %15 : vector<4x16xf32>
    %cst_16 = arith.constant 0.000000e+00 : f32
    %17 = vector.broadcast %cst_16 : f32 to vector<4x16xf32>
    %18 = arith.maximumf %16, %17 : vector<4x16xf32>
    %c0_17 = arith.constant 0 : index
    %c0_18 = arith.constant 0 : index
    %19 = vector.load %arg8[%c0_17, %c0_18] : memref<1x16xf32, #tpu.memory_space<vmem>>, vector<1x16xf32>
    %20 = vector.broadcast %19 : vector<1x16xf32> to vector<4x16xf32>
    %21 = arith.mulf %18, %20 : vector<4x16xf32>
    %cst_19 = arith.constant dense<0.000000e+00> : vector<4xf32>
    %22 = vector.multi_reduction <add>, %21, %cst_19 [1] : vector<4x16xf32> to vector<4xf32>
    %23 = vector.shape_cast %22 : vector<4xf32> to vector<4x1xf32>
    %c0_20 = arith.constant 0 : index
    %c0_21 = arith.constant 0 : index
    %24 = vector.load %arg9[%c0_20, %c0_21] : memref<1x1xf32, #tpu.memory_space<vmem>>, vector<1x1xf32>
    %25 = vector.broadcast %24 : vector<1x1xf32> to vector<4x1xf32>
    %26 = arith.addf %23, %25 : vector<4x1xf32>
    %c0_22 = arith.constant 0 : index
    %c0_23 = arith.constant 0 : index
    %27 = vector.load %arg10[%c0_22, %c0_23] : memref<4x1xf32, #tpu.memory_space<vmem>>, vector<4x1xf32>
    tpu.vector_store %arg10[%c0_22, %c0_23], %26 {strides = array<i32>} : memref<4x1xf32, #tpu.memory_space<vmem>>, vector<4x1xf32>,
    return
  }
  func.func @transform_0(%arg0: i32) -> (i32, i32) {
    %c0_i32 = arith.constant 0 : i32
    %c0_i32_0 = arith.constant 0 : i32
    return %arg0, %c0_i32 : i32, i32
  }
  func.func @transform_1(%arg0: i32) -> (i32, i32) {
    %c0_i32 = arith.constant 0 : i32
    %c0_i32_0 = arith.constant 0 : i32
    return %arg0, %c0_i32 : i32, i32
  }
  func.func @transform_2(%arg0: i32) -> (i32, i32) {
    %c0_i32 = arith.constant 0 : i32
    %c0_i32_0 = arith.constant 0 : i32
    %c0_i32_1 = arith.constant 0 : i32
    return %c0_i32, %c0_i32_0 : i32, i32
  }
  func.func @transform_3(%arg0: i32) -> (i32, i32) {
    %c0_i32 = arith.constant 0 : i32
    %c0_i32_0 = arith.constant 0 : i32
    %c0_i32_1 = arith.constant 0 : i32
    return %c0_i32, %c0_i32_0 : i32, i32
  }
  func.func @transform_4(%arg0: i32) -> (i32, i32) {
    %c0_i32 = arith.constant 0 : i32
    %c0_i32_0 = arith.constant 0 : i32
    %c0_i32_1 = arith.constant 0 : i32
    return %c0_i32, %c0_i32_0 : i32, i32
  }
  func.func @transform_5(%arg0: i32) -> (i32, i32) {
    %c0_i32 = arith.constant 0 : i32
    %c0_i32_0 = arith.constant 0 : i32
    %c0_i32_1 = arith.constant 0 : i32
    return %c0_i32, %c0_i32_0 : i32, i32
  }
  func.func @transform_6(%arg0: i32) -> (i32, i32) {
    %c0_i32 = arith.constant 0 : i32
    %c0_i32_0 = arith.constant 0 : i32
    %c0_i32_1 = arith.constant 0 : i32
    return %c0_i32, %c0_i32_0 : i32, i32
  }
  func.func @transform_7(%arg0: i32) -> (i32, i32) {
    %c0_i32 = arith.constant 0 : i32
    %c0_i32_0 = arith.constant 0 : i32
    %c0_i32_1 = arith.constant 0 : i32
    return %c0_i32, %c0_i32_0 : i32, i32
  }
  func.func @transform_8(%arg0: i32) -> (i32, i32) {
    %c0_i32 = arith.constant 0 : i32
    %c0_i32_0 = arith.constant 0 : i32
    %c0_i32_1 = arith.constant 0 : i32
    return %c0_i32, %c0_i32_0 : i32, i32
  }
  func.func @transform_9(%arg0: i32) -> (i32, i32) {
    %c0_i32 = arith.constant 0 : i32
    %c0_i32_0 = arith.constant 0 : i32
    return %arg0, %c0_i32 : i32, i32
  }
}

</mosaic_0001>

<bundles_post_ra>
// kernel: tpu_custom_call.1
= control target key start
LH: loop header
LB: loop body
LE: loop exit
PB: predicated region body
PF: predicated region fallthrough
CT: control target
= control target key end

     0   :  { %vm40_vm0 = vcmask 64512   ;;  %v354_v0 = vmov 0.0   ;;  %vm355_vm1 = vmmov 0   ;;  %vm114_vm2 = vcmask 195584   ;;  %s451_s3 = inlined_call_operand.vmem [shape: f32[8,32], index: 3, kind: input, shape index: {}]   ;;  %s452_s1 = inlined_call_operand.vmem [shape: f32[4,8], index: 1, kind: input, shape index: {}]   ;;  %s453_s2 = inlined_call_operand.vmem [shape: f32[24,32], index: 2, kind: input, shape index: {}]   ;;  %s454_s0 = inlined_call_operand.vmem [shape: f32[4,24], index: 0, kind: input, shape index: {}]   ;;  %s455_s5 = inlined_call_operand.vmem [shape: f32[32,16], index: 5, kind: input, shape index: {}]   ;;  %s456_s4 = inlined_call_operand.vmem [shape: f32[1,32], index: 4, kind: input, shape index: {}]   ;;  %s457_s8 = inlined_call_operand.<no memory space> [shape: f32[1,1], index: 8, kind: input, shape index: {}]   ;;  %s458_s6 = inlined_call_operand.vmem [shape: f32[1,16], index: 6, kind: input, shape index: {}]   ;;  %s459_s7 = inlined_call_operand.vmem [shape: f32[1,16], index: 7, kind: input, shape index: {}]   ;;  %s460_s9 = inlined_call_operand.vmem [shape: f32[4,1], index: 9, kind: output, shape index: {}]  }
   0x1   :  { %327 = vmatprep.subr.mxu1 %v354_v0  ;;  %v39_v1 = vld [vmem:[%s451_s3] sm:$0xff]  ;;  %329 = vmatprep.mubr.msk.f32.mxu1 %vm355_vm1, %v354_v0  ;;  %v37_v3 = vld [vmem:[%s453_s2 + $0x10] sm:$0xff]  ;;  %v36_v4 = vld [vmem:[%s453_s2 + $0x8] sm:$0xff]  ;;  %vm208_vm3 = vcmask 261120   ;;  %v14_v19 = vstv %s457_s8  ;;  %vm291_vm4 = vcmask 125952   ;;  %vm303_vm5 = vcmask 3072  }
   0x2   :  { %v38_v2 = vld [vmem:[%s452_s1] sm:$0xf]  ;;  %328 = vmatpush3.msra.mxu1 %v39_v1  ;;  %341 = vmatprep.subr.mxu0 %v354_v0  ;;  %v200_v7 = vld [vmem:[%s455_s5 + $0x18] sm:$0xff]  ;;  %v199_v8 = vld [vmem:[%s455_s5 + $0x10] sm:$0xff]  ;;  %15 = vst [vmem:[#allocation2] sm:$0x1] %v14_v19 }
   0x3   :  { %330 = vmatmul.mubr.msk.f32.vlgmr.msra.gmra.mxu1 %vm40_vm0, %v38_v2  ;;  %332 = vmatprep.subr.mxu1 %v354_v0  ;;  %v35_v5 = vld [vmem:[%s453_s2] sm:$0xff]  ;;  %v198_v9 = vld [vmem:[%s455_s5 + $0x8] sm:$0xff] }
   0x4   :  { %333 = vmatpush3.msra.mxu1 %v37_v3  ;;  %338 = vmatprep.mubr.msk.f32.mxu1 %vm355_vm1, %v354_v0  ;;  %v34_v6 = vld [vmem:[%s454_s0] sm:$0xf] }
   0x5   :  { %334 = vmatprep.subr.mxu1 %v354_v0  ;;  %349 = vmatprep.mubr.msk.f32.mxu0 %vm355_vm1, %v354_v0  ;;  %v197_v10 = vld [vmem:[%s455_s5] sm:$0xff] }
   0x6   :  { %335 = vmatpush3.msra.mxu1 %v36_v4  ;;  %342 = vmatpush3.msra.mxu0 %v200_v7  ;;  %v311_v14 = vld [vmem:[%s456_s4] ss:$0 sm:$0xff] }
   0x7   :  { %336 = vmatprep.subr.mxu1 %v354_v0  ;;  %343 = vmatprep.subr.mxu0 %v354_v0  ;;  %v312_v20 = vld [vmem:[%s458_s6] ss:$0 sm:$0xff] }
   0x8   :  { %337 = vmatpush3.msra.mxu1 %v35_v5  ;;  %344 = vmatpush3.msra.mxu0 %v199_v8  ;;  %v314_v24 = vld [vmem:[%s459_s7] ss:$0 sm:$0xff] }
   0x9   :  { %339 = vmatmul.mubr.msk.f32.vlgmr.msra.gmra.mxu1 %vm114_vm2, %v34_v6  ;;  %345 = vmatprep.subr.mxu0 %v354_v0  ;;  %v315_v28 = vld [vmem:[#allocation2] ss:$0 sm:$0xff] }
   0xa   :  { %346 = vmatpush3.msra.mxu0 %v198_v9 }
   0xb   :  { %347 = vmatprep.subr.mxu0 %v354_v0 }
   0xc   :  { %348 = vmatpush3.msra.mxu0 %v197_v10 }
  0xc3   :  { %v110_v11 = vpop.f32.mrf.mxu1 }
  0xc5   :  { %v331_v12 = vpop.f32.mrf.mxu1 }
  0xc9   :  { %v184_v13 = vpop.f32.mrf.mxu1 }
  0xca   :  { %v185_v15 = vadd.f32 %v184_v13, %v110_v11 }
  0xcb   :  { %v340_v16 = vpop.f32.mrf.mxu1 }
  0xcc   :  { %v195_v17 = vadd.f32 %v311_v14, %v185_v15 }
  0xce   :  { %v196_v18 = vmax.f32 %v195_v17, 0.0 }
  0xd0   :  { %350 = vmatmul.mubr.msk.f32.vlgmr.msra.gmra.mxu0 %vm208_vm3, %v196_v18 }
 0x190   :  { %v278_v21 = vpop.f32.mrf.mxu0 }
 0x191   :  { %v279_v22 = vadd.f32 %v312_v20, %v278_v21 }
 0x192   :  { %v351_v23 = vpop.f32.mrf.mxu0 }
 0x193   :  { %v282_v25 = vmax.f32 %v279_v22, 0.0 }
 0x195   :  { %v290_v26 = vmul.f32 %v314_v24, %v282_v25 }
 0x197   :  { %v292_v27 = vsel %vm291_vm4, %v290_v26, 0.0 }
 0x198   :  { %293 = vadd.xlane.f32.xlu0 %v292_v27 }
 0x221   :  { %v294_v29 = vpop.xlane.xlu0 %293 }
 0x222   :  { %v302_v30 = vadd.f32 %v315_v28, %v294_v29 }
 0x224   :  { %304 = vst.msk [vmem:[%s460_s9] sm:$0xf] %vm303_vm5, %v302_v30 }

</bundles_post_ra>
